<compile_context>
chip_gen: v6e
topology: v6e:2x2x1
jax: 0.10.0
libtpu: 0.0.40
codegen_flags: <defaults>
</compile_context>

<pallas_src>
import numpy as np
import jax
import jax.numpy as jnp
from jax import lax
from jax.experimental import pallas as pl
from jax.experimental.pallas import tpu as pltpu  # noqa: F401  (TPU backend assumed)

# Problem sizes implied by the module.
C_IN = 128
C_OUT = 32
KH = KW = 3
H = W = 14
HW = H * W

# Column-edge masks (host constants; depend only on shapes):
#   row 0: zeroes taps that read column w-1 (kw = 0) at output column w == 0
#   row 1: zeroes taps that read column w+1 (kw = 2) at output column w == W-1
_col = np.arange(HW) % W
EDGE_MASKS = np.stack([(_col != 0), (_col != W - 1)]).astype(np.float32)  # (2, HW)


def _shift_lanes(a, d):
    """Return b with b[:, p] = a[:, p + d] if 0 <= p + d < n, else 0 (zero fill, no wrap)."""
    n = a.shape[-1]
    if d == 0:
        return a
    zeros = jnp.zeros((a.shape[0], abs(d)), a.dtype)
    if d > 0:
        return jnp.concatenate([a[:, d:], zeros], axis=-1)
    return jnp.concatenate([zeros, a[:, : n + d]], axis=-1)


def relu_conv3x3_kernel(x_ref, w_ref, m_ref, o_ref):
    """x_ref: (C_IN, HW); w_ref: (KW*KH*C_OUT, C_IN); m_ref: (2, HW); o_ref: (C_OUT, HW)."""
    xr = jnp.maximum(x_ref[...], 0.0)            # fused ReLU
    masks = m_ref[...]                           # (2, HW)

    # Single MXU matmul covering all 9 taps:
    #   (KW*KH*C_OUT, C_IN) @ (C_IN, HW) -> (KW*KH*C_OUT, HW), f32 accumulation.
    y = jnp.dot(w_ref[...], xr, preferred_element_type=jnp.float32)

    acc = None
    for kw in range(KW):
        # Tap (kh, kw) contributes y_slab[:, p + d] with d = (kh-1)*W + (kw-1).
        part = None
        for kh in range(KH):
            r = (kw * KH + kh) * C_OUT           # sublane-aligned (multiple of 8) row slice
            slab = _shift_lanes(y[r:r + C_OUT, :], (kh - 1) * W + (kw - 1))
            part = slab if part is None else part + slab
        # Column-border correction for the left / right tap groups only.
        if kw == 0:
            part = part * masks[0:1, :]
        elif kw == KW - 1:
            part = part * masks[1:2, :]
        acc = part if acc is None else acc + part

    o_ref[...] = acc


def pack_weights(w_hwio):
    """(KH, KW, C_IN, C_OUT) HWIO conv weight -> (KW*KH*C_OUT, C_IN).

    Row index = kw * (KH*C_OUT) + kh * C_OUT + c_out.  One-time layout prep (host side).
    """
    assert w_hwio.shape == (KH, KW, C_IN, C_OUT)
    return jnp.transpose(w_hwio, (1, 0, 3, 2)).reshape(KW * KH * C_OUT, C_IN)


@jax.jit
def relu_conv2d(x_nchw, w_packed):
    """x_nchw: (1, C_IN, H, W); w_packed: (KW*KH*C_OUT, C_IN). Returns (1, C_OUT, H, W)."""
    assert x_nchw.shape == (1, C_IN, H, W)
    x_flat = x_nchw.reshape(C_IN, HW)            # free row-major reshape (N = 1)
    out_flat = pl.pallas_call(
        relu_conv3x3_kernel,
        out_shape=jax.ShapeDtypeStruct((C_OUT, HW), jnp.float32),
    )(x_flat, w_packed, jnp.asarray(EDGE_MASKS))
    return out_flat.reshape(1, C_OUT, H, W)      # free row-major reshape back to NCHW


def reference(x_nchw, w_hwio):
    """Pure-JAX reference: ReLU then 3x3 'same' conv (NCHW activations, HWIO weights)."""
    x = jnp.maximum(x_nchw, 0.0)
    return lax.conv_general_dilated(
        x, w_hwio,
        window_strides=(1, 1),
        padding=((1, 1), (1, 1)),
        dimension_numbers=("NCHW", "HWIO", "NCHW"),
    )


if __name__ == "__main__":
    key = jax.random.PRNGKey(0)
    kx, kw_key = jax.random.split(key)

    # Deterministic input matching the module's forward: (1, 128, 14, 14).
    x = jax.random.normal(kx, (1, C_IN, H, W), dtype=jnp.float32)

    # Deterministic synthetic conv weight (Kaiming-ish scale), stored HWIO.
    fan_in = C_IN * KH * KW
    w_hwio = jax.random.normal(kw_key, (KH, KW, C_IN, C_OUT), dtype=jnp.float32) * (2.0 / fan_in) ** 0.5

    w_packed = pack_weights(w_hwio)              # one-time weight layout prep

    out = jax.block_until_ready(relu_conv2d(x, w_packed))
    ref = jax.block_until_ready(reference(x, w_hwio))

    assert out.shape == (1, C_OUT, H, W), out.shape
    assert jnp.allclose(out, ref, atol=1e-4, rtol=1e-4), "mismatch vs reference conv"

    print("KERNEL_OK")
</pallas_src>

<mosaic_0001>
module attributes {stable_mosaic.version = 11 : i64} {
  func.func @relu_conv3x3_kernel(%arg0: memref<128x196xf32, #tpu.memory_space<vmem>>, %arg1: memref<288x128xf32, #tpu.memory_space<vmem>>, %arg2: memref<2x196xf32, #tpu.memory_space<vmem>>, %arg3: memref<32x196xf32, #tpu.memory_space<vmem>>) attributes {dimension_semantics = [], scalar_prefetch = 0 : i64, scratch_operands = 0 : i64, tpu.core_type = #tpu.core_type<tc>} {
    %c0 = arith.constant 0 : index
    %c0_0 = arith.constant 0 : index
    %0 = vector.load %arg0[%c0, %c0_0] : memref<128x196xf32, #tpu.memory_space<vmem>>, vector<128x196xf32>
    %cst = arith.constant 0.000000e+00 : f32
    %1 = vector.broadcast %cst : f32 to vector<128x196xf32>
    %2 = arith.maximumf %0, %1 : vector<128x196xf32>
    %c0_1 = arith.constant 0 : index
    %c0_2 = arith.constant 0 : index
    %3 = vector.load %arg2[%c0_1, %c0_2] : memref<2x196xf32, #tpu.memory_space<vmem>>, vector<2x196xf32>
    %c0_3 = arith.constant 0 : index
    %c0_4 = arith.constant 0 : index
    %4 = vector.load %arg1[%c0_3, %c0_4] : memref<288x128xf32, #tpu.memory_space<vmem>>, vector<288x128xf32>
    %cst_5 = arith.constant dense<0.000000e+00> : vector<288x196xf32>
    %5 = tpu.matmul %4, %2, %cst_5 {dimension_numbers = #tpu.dot_dimension_numbers<[1], [0], [0], [1], [0, 0, 1, 1], [], []>} : vector<288x128xf32>, vector<128x196xf32>, vector<288x196xf32> -> vector<288x196xf32>
    %6 = vector.extract_strided_slice %5 {offsets = [0, 0], sizes = [32, 196], strides = [1, 1]} : vector<288x196xf32> to vector<32x196xf32>
    %cst_6 = arith.constant 0.000000e+00 : f32
    %7 = vector.broadcast %cst_6 : f32 to vector<32x15xf32>
    %8 = vector.extract_strided_slice %6 {offsets = [0, 0], sizes = [32, 181], strides = [1, 1]} : vector<32x196xf32> to vector<32x181xf32>
    %9 = tpu.concatenate %7, %8 in 1 : vector<32x15xf32>, vector<32x181xf32> -> vector<32x196xf32>
    %10 = vector.extract_strided_slice %5 {offsets = [32, 0], sizes = [32, 196], strides = [1, 1]} : vector<288x196xf32> to vector<32x196xf32>
    %cst_7 = arith.constant 0.000000e+00 : f32
    %11 = vector.broadcast %cst_7 : f32 to vector<32x1xf32>
    %12 = vector.extract_strided_slice %10 {offsets = [0, 0], sizes = [32, 195], strides = [1, 1]} : vector<32x196xf32> to vector<32x195xf32>
    %13 = tpu.concatenate %11, %12 in 1 : vector<32x1xf32>, vector<32x195xf32> -> vector<32x196xf32>
    %14 = arith.addf %9, %13 : vector<32x196xf32>
    %15 = vector.extract_strided_slice %5 {offsets = [64, 0], sizes = [32, 196], strides = [1, 1]} : vector<288x196xf32> to vector<32x196xf32>
    %cst_8 = arith.constant 0.000000e+00 : f32
    %16 = vector.broadcast %cst_8 : f32 to vector<32x13xf32>
    %17 = vector.extract_strided_slice %15 {offsets = [0, 13], sizes = [32, 183], strides = [1, 1]} : vector<32x196xf32> to vector<32x183xf32>
    %18 = tpu.concatenate %17, %16 in 1 : vector<32x183xf32>, vector<32x13xf32> -> vector<32x196xf32>
    %19 = arith.addf %14, %18 : vector<32x196xf32>
    %20 = vector.extract_strided_slice %3 {offsets = [0, 0], sizes = [1, 196], strides = [1, 1]} : vector<2x196xf32> to vector<1x196xf32>
    %21 = vector.broadcast %20 : vector<1x196xf32> to vector<32x196xf32>
    %22 = arith.mulf %19, %21 : vector<32x196xf32>
    %23 = vector.extract_strided_slice %5 {offsets = [96, 0], sizes = [32, 196], strides = [1, 1]} : vector<288x196xf32> to vector<32x196xf32>
    %cst_9 = arith.constant 0.000000e+00 : f32
    %24 = vector.broadcast %cst_9 : f32 to vector<32x14xf32>
    %25 = vector.extract_strided_slice %23 {offsets = [0, 0], sizes = [32, 182], strides = [1, 1]} : vector<32x196xf32> to vector<32x182xf32>
    %26 = tpu.concatenate %24, %25 in 1 : vector<32x14xf32>, vector<32x182xf32> -> vector<32x196xf32>
    %27 = vector.extract_strided_slice %5 {offsets = [128, 0], sizes = [32, 196], strides = [1, 1]} : vector<288x196xf32> to vector<32x196xf32>
    %28 = arith.addf %26, %27 : vector<32x196xf32>
    %29 = vector.extract_strided_slice %5 {offsets = [160, 0], sizes = [32, 196], strides = [1, 1]} : vector<288x196xf32> to vector<32x196xf32>
    %cst_10 = arith.constant 0.000000e+00 : f32
    %30 = vector.broadcast %cst_10 : f32 to vector<32x14xf32>
    %31 = vector.extract_strided_slice %29 {offsets = [0, 14], sizes = [32, 182], strides = [1, 1]} : vector<32x196xf32> to vector<32x182xf32>
    %32 = tpu.concatenate %31, %30 in 1 : vector<32x182xf32>, vector<32x14xf32> -> vector<32x196xf32>
    %33 = arith.addf %28, %32 : vector<32x196xf32>
    %34 = arith.addf %22, %33 : vector<32x196xf32>
    %35 = vector.extract_strided_slice %5 {offsets = [192, 0], sizes = [32, 196], strides = [1, 1]} : vector<288x196xf32> to vector<32x196xf32>
    %cst_11 = arith.constant 0.000000e+00 : f32
    %36 = vector.broadcast %cst_11 : f32 to vector<32x13xf32>
    %37 = vector.extract_strided_slice %35 {offsets = [0, 0], sizes = [32, 183], strides = [1, 1]} : vector<32x196xf32> to vector<32x183xf32>
    %38 = tpu.concatenate %36, %37 in 1 : vector<32x13xf32>, vector<32x183xf32> -> vector<32x196xf32>
    %39 = vector.extract_strided_slice %5 {offsets = [224, 0], sizes = [32, 196], strides = [1, 1]} : vector<288x196xf32> to vector<32x196xf32>
    %cst_12 = arith.constant 0.000000e+00 : f32
    %40 = vector.broadcast %cst_12 : f32 to vector<32x1xf32>
    %41 = vector.extract_strided_slice %39 {offsets = [0, 1], sizes = [32, 195], strides = [1, 1]} : vector<32x196xf32> to vector<32x195xf32>
    %42 = tpu.concatenate %41, %40 in 1 : vector<32x195xf32>, vector<32x1xf32> -> vector<32x196xf32>
    %43 = arith.addf %38, %42 : vector<32x196xf32>
    %44 = vector.extract_strided_slice %5 {offsets = [256, 0], sizes = [32, 196], strides = [1, 1]} : vector<288x196xf32> to vector<32x196xf32>
    %cst_13 = arith.constant 0.000000e+00 : f32
    %45 = vector.broadcast %cst_13 : f32 to vector<32x15xf32>
    %46 = vector.extract_strided_slice %44 {offsets = [0, 15], sizes = [32, 181], strides = [1, 1]} : vector<32x196xf32> to vector<32x181xf32>
    %47 = tpu.concatenate %46, %45 in 1 : vector<32x181xf32>, vector<32x15xf32> -> vector<32x196xf32>
    %48 = arith.addf %43, %47 : vector<32x196xf32>
    %49 = vector.extract_strided_slice %3 {offsets = [1, 0], sizes = [1, 196], strides = [1, 1]} : vector<2x196xf32> to vector<1x196xf32>
    %50 = vector.broadcast %49 : vector<1x196xf32> to vector<32x196xf32>
    %51 = arith.mulf %48, %50 : vector<32x196xf32>
    %52 = arith.addf %34, %51 : vector<32x196xf32>
    %c0_14 = arith.constant 0 : index
    %c0_15 = arith.constant 0 : index
    %53 = vector.load %arg3[%c0_14, %c0_15] : memref<32x196xf32, #tpu.memory_space<vmem>>, vector<32x196xf32>
    tpu.vector_store %arg3[%c0_14, %c0_15], %52 {strides = array<i32>} : memref<32x196xf32, #tpu.memory_space<vmem>>, vector<32x196xf32>,
    return
  }
}

</mosaic_0001>

<bundles_post_ra>
// kernel: relu_conv2d.1
= control target key start
LH: loop header
LB: loop body
LE: loop exit
PB: predicated region body
PF: predicated region fallthrough
CT: control target
= control target key end

     0   :  { %v899_v3 = vmov 0.0   ;;  %s900_s10 = smov 15   ;;  %s902_s11 = smov 1   ;;  %vm420_vm0 = vcmask 121856   ;;  %vm636_vm1 = vcmask 932864   ;;  %vm461_vm2 = vcmask 7168   ;;  %s1476_s0 = inlined_call_operand.vmem [shape: f32[128,196], index: 0, kind: input, shape index: {}]   ;;  %s1477_s1 = inlined_call_operand.vmem [shape: f32[288,128], index: 1, kind: input, shape index: {}]   ;;  %s1478_s2 = inlined_call_operand.vmem [shape: f32[2,196], index: 2, kind: input, shape index: {}]   ;;  %s1479_s3 = inlined_call_operand.vmem [shape: f32[32,196], index: 3, kind: output, shape index: {}]  }
   0x1   :  { %v45_v0 = vld [vmem:[%s1476_s0 + $0xf8] sm:$0xff]  ;;  %v44_v1 = vld [vmem:[%s1476_s0 + $0xf0] sm:$0xff]  ;;  %v43_v2 = vld [vmem:[%s1476_s0 + $0xe8] sm:$0xff]  ;;  %179 = vmatprep.mubr.f32.mxu0 %v899_v3  ;;  %287 = vmatprep.mubr.f32.mxu1 %v899_v3  ;;  %s903_s12 = smov 13   ;;  %s904_s13 = smov 115   ;;  %vm510_vm3 = vcmask 941056  }
   0x2   :  { %v77_v4 = vmax.f32 %v45_v0, 0.0  ;;  %v76_v5 = vmax.f32 %v44_v1, 0.0  ;;  %v75_v6 = vmax.f32 %v43_v2, 0.0  ;;  %v42_v7 = vld [vmem:[%s1476_s0 + $0xe0] sm:$0xff]  ;;  %v41_v8 = vld [vmem:[%s1476_s0 + $0xd8] sm:$0xff]  ;;  %v40_v9 = vld [vmem:[%s1476_s0 + $0xd0] sm:$0xff] }
   0x3   :  { %v74_v10 = vmax.f32 %v42_v7, 0.0  ;;  %v39_v11 = vld [vmem:[%s1476_s0 + $0xc8] sm:$0xff]  ;;  %v73_v12 = vmax.f32 %v41_v8, 0.0  ;;  %v38_v13 = vld [vmem:[%s1476_s0 + $0xc0] sm:$0xff]  ;;  %v72_v14 = vmax.f32 %v40_v9, 0.0  ;;  %v37_v15 = vld [vmem:[%s1476_s0 + $0xb8] sm:$0xff] }
   0x4   :  { %115 = vmatprep.subr.mxu0 %v77_v4  ;;  %858 = vmatprep.subr.mxu1 %v77_v4  ;;  %v71_v16 = vmax.f32 %v39_v11, 0.0  ;;  %v36_v17 = vld [vmem:[%s1476_s0 + $0xb0] sm:$0xff]  ;;  %v70_v18 = vmax.f32 %v38_v13, 0.0  ;;  %v35_v19 = vld [vmem:[%s1476_s0 + $0xa8] sm:$0xff]  ;;  %v69_v20 = vmax.f32 %v37_v15, 0.0  ;;  %v34_v21 = vld [vmem:[%s1476_s0 + $0xa0] sm:$0xff] }
   0x5   :  { %116 = vmatpush1.msra.mxu0 %v76_v5  ;;  %874 = vmatpush1.msra.mxu1 %v76_v5  ;;  %v68_v22 = vmax.f32 %v36_v17, 0.0  ;;  %v33_v23 = vld [vmem:[%s1476_s0 + $0x98] sm:$0xff]  ;;  %v67_v24 = vmax.f32 %v35_v19, 0.0  ;;  %v32_v25 = vld [vmem:[%s1476_s0 + $0x90] sm:$0xff]  ;;  %v66_v26 = vmax.f32 %v34_v21, 0.0  ;;  %v31_v27 = vld [vmem:[%s1476_s0 + $0x88] sm:$0xff] }
   0x6   :  { %117 = vmatprep.subr.mxu0 %v75_v6  ;;  %859 = vmatprep.subr.mxu1 %v75_v6  ;;  %v65_v28 = vmax.f32 %v33_v23, 0.0  ;;  %v30_v29 = vld [vmem:[%s1476_s0 + $0x80] sm:$0xff]  ;;  %v64_v30 = vmax.f32 %v32_v25, 0.0  ;;  %v29_v31 = vld [vmem:[%s1476_s0 + $0x78] sm:$0xff]  ;;  %v63_v32 = vmax.f32 %v31_v27, 0.0  ;;  %v28_v33 = vld [vmem:[%s1476_s0 + $0x70] sm:$0xff] }
   0x7   :  { %118 = vmatpush1.msra.mxu0 %v74_v10  ;;  %875 = vmatpush1.msra.mxu1 %v74_v10  ;;  %v62_v34 = vmax.f32 %v30_v29, 0.0  ;;  %v27_v35 = vld [vmem:[%s1476_s0 + $0x68] sm:$0xff]  ;;  %v61_v36 = vmax.f32 %v29_v31, 0.0  ;;  %v26_v37 = vld [vmem:[%s1476_s0 + $0x60] sm:$0xff]  ;;  %v60_v38 = vmax.f32 %v28_v33, 0.0  ;;  %v25_v39 = vld [vmem:[%s1476_s0 + $0x58] sm:$0xff] }
   0x8   :  { %119 = vmatprep.subr.mxu0 %v73_v12  ;;  %860 = vmatprep.subr.mxu1 %v73_v12  ;;  %v59_v40 = vmax.f32 %v27_v35, 0.0  ;;  %v24_v41 = vld [vmem:[%s1476_s0 + $0x50] sm:$0xff]  ;;  %v58_v42 = vmax.f32 %v26_v37, 0.0  ;;  %v23_v43 = vld [vmem:[%s1476_s0 + $0x48] sm:$0xff]  ;;  %v57_v44 = vmax.f32 %v25_v39, 0.0  ;;  %v22_v45 = vld [vmem:[%s1476_s0 + $0x40] sm:$0xff] }
   0x9   :  { %120 = vmatpush1.msra.mxu0 %v72_v14  ;;  %876 = vmatpush1.msra.mxu1 %v72_v14  ;;  %v56_v46 = vmax.f32 %v24_v41, 0.0  ;;  %v21_v47 = vld [vmem:[%s1476_s0 + $0x38] sm:$0xff]  ;;  %v55_v48 = vmax.f32 %v23_v43, 0.0  ;;  %v20_v49 = vld [vmem:[%s1476_s0 + $0x30] sm:$0xff]  ;;  %v54_v50 = vmax.f32 %v22_v45, 0.0  ;;  %v19_v51 = vld [vmem:[%s1476_s0 + $0x28] sm:$0xff] }
   0xa   :  { %121 = vmatprep.subr.mxu0 %v71_v16  ;;  %861 = vmatprep.subr.mxu1 %v71_v16  ;;  %v53_v52 = vmax.f32 %v21_v47, 0.0  ;;  %v18_v53 = vld [vmem:[%s1476_s0 + $0x20] sm:$0xff]  ;;  %v52_v54 = vmax.f32 %v20_v49, 0.0  ;;  %v17_v55 = vld [vmem:[%s1476_s0 + $0x18] sm:$0xff]  ;;  %v51_v56 = vmax.f32 %v19_v51, 0.0  ;;  %v16_v57 = vld [vmem:[%s1476_s0 + $0x10] sm:$0xff] }
   0xb   :  { %122 = vmatpush1.msra.mxu0 %v70_v18  ;;  %877 = vmatpush1.msra.mxu1 %v70_v18  ;;  %v50_v58 = vmax.f32 %v18_v53, 0.0  ;;  %v15_v59 = vld [vmem:[%s1476_s0 + $0x8] sm:$0xff]  ;;  %v49_v60 = vmax.f32 %v17_v55, 0.0  ;;  %v14_v61 = vld [vmem:[%s1476_s0] sm:$0xff]  ;;  %v48_v62 = vmax.f32 %v16_v57, 0.0  ;;  %v97_v2 = vld [vmem:[%s1477_s1 + $0x90] sm:$0xff] }
   0xc   :  { %123 = vmatprep.subr.mxu0 %v69_v20  ;;  %862 = vmatprep.subr.mxu1 %v69_v20  ;;  %v47_v63 = vmax.f32 %v15_v59, 0.0  ;;  %v46_v0 = vmax.f32 %v14_v61, 0.0  ;;  %v79_v1 = vld [vmem:[%s1477_s1] sm:$0xff]  ;;  %v80_v4 = vld [vmem:[%s1477_s1 + $0x8] sm:$0xff]  ;;  %v98_v5 = vld [vmem:[%s1477_s1 + $0x98] sm:$0xff]  ;;  %s905_s14 = smov 127  }
   0xd   :  { %124 = vmatpush1.msra.mxu0 %v68_v22  ;;  %878 = vmatpush1.msra.mxu1 %v68_v22  ;;  %v81_v6 = vld [vmem:[%s1477_s1 + $0x10] sm:$0xff]  ;;  %v99_v7 = vld [vmem:[%s1477_s1 + $0xa0] sm:$0xff]  ;;  %v82_v8 = vld [vmem:[%s1477_s1 + $0x18] sm:$0xff]  ;;  %s906_s15 = smov 14   ;;  %s907_s16 = smov 113   ;;  %vm523_vm4 = vcmask 449536  }
   0xe   :  { %125 = vmatprep.subr.mxu0 %v67_v24  ;;  %863 = vmatprep.subr.mxu1 %v67_v24  ;;  %v100_v9 = vld [vmem:[%s1477_s1 + $0xa8] sm:$0xff]  ;;  %v83_v10 = vld [vmem:[%s1477_s1 + $0x20] sm:$0xff]  ;;  %v101_v11 = vld [vmem:[%s1477_s1 + $0xb0] sm:$0xff]  ;;  %vm587_vm5 = vcmask 113664   ;;  %vm649_vm6 = vcmask 441344   ;;  %vm735_vm7 = vcmask 1039360  }
   0xf   :  { %126 = vmatpush1.msra.mxu0 %v66_v26  ;;  %879 = vmatpush1.msra.mxu1 %v66_v26  ;;  %v84_v12 = vld [vmem:[%s1477_s1 + $0x28] sm:$0xff]  ;;  %v102_v13 = vld [vmem:[%s1477_s1 + $0xb8] sm:$0xff]  ;;  %v85_v14 = vld [vmem:[%s1477_s1 + $0x30] sm:$0xff]  ;;  %vm748_vm8 = vcmask 547840   ;;  %vm694_vm9 = vcmask 105472   ;;  %vm785_vm10 = vcmask 924672  }
  0x10   :  { %127 = vmatprep.subr.mxu0 %v65_v28  ;;  %864 = vmatprep.subr.mxu1 %v65_v28  ;;  %v103_v15 = vld [vmem:[%s1477_s1 + $0xc0] sm:$0xff]  ;;  %v86_v16 = vld [vmem:[%s1477_s1 + $0x38] sm:$0xff]  ;;  %v104_v17 = vld [vmem:[%s1477_s1 + $0xc8] sm:$0xff]  ;;  %vm798_vm11 = vcmask 433152   ;;  %vm846_vm12 = vcmask 556032  }
  0x11   :  { %128 = vmatpush1.msra.mxu0 %v64_v30  ;;  %880 = vmatpush1.msra.mxu1 %v64_v30  ;;  %v87_v18 = vld [vmem:[%s1477_s1 + $0x40] sm:$0xff]  ;;  %v105_v19 = vld [vmem:[%s1477_s1 + $0xd0] sm:$0xff]  ;;  %v88_v20 = vld [vmem:[%s1477_s1 + $0x48] sm:$0xff] }
  0x12   :  { %129 = vmatprep.subr.mxu0 %v63_v32  ;;  %865 = vmatprep.subr.mxu1 %v63_v32  ;;  %v106_v21 = vld [vmem:[%s1477_s1 + $0xd8] sm:$0xff]  ;;  %v89_v22 = vld [vmem:[%s1477_s1 + $0x50] sm:$0xff]  ;;  %v107_v23 = vld [vmem:[%s1477_s1 + $0xe0] sm:$0xff] }
  0x13   :  { %130 = vmatpush1.msra.mxu0 %v62_v34  ;;  %881 = vmatpush1.msra.mxu1 %v62_v34  ;;  %v90_v24 = vld [vmem:[%s1477_s1 + $0x58] sm:$0xff]  ;;  %v108_v25 = vld [vmem:[%s1477_s1 + $0xe8] sm:$0xff]  ;;  %v91_v26 = vld [vmem:[%s1477_s1 + $0x60] sm:$0xff] }
  0x14   :  { %131 = vmatprep.subr.mxu0 %v61_v36  ;;  %866 = vmatprep.subr.mxu1 %v61_v36  ;;  %v109_v27 = vld [vmem:[%s1477_s1 + $0xf0] sm:$0xff]  ;;  %v92_v28 = vld [vmem:[%s1477_s1 + $0x68] sm:$0xff]  ;;  %v110_v29 = vld [vmem:[%s1477_s1 + $0xf8] sm:$0xff] }
  0x15   :  { %132 = vmatpush1.msra.mxu0 %v60_v38  ;;  %882 = vmatpush1.msra.mxu1 %v60_v38  ;;  %v93_v30 = vld [vmem:[%s1477_s1 + $0x70] sm:$0xff]  ;;  %v111_v31 = vld [vmem:[%s1477_s1 + $0x100] sm:$0xff]  ;;  %v94_v32 = vld [vmem:[%s1477_s1 + $0x78] sm:$0xff] }
  0x16   :  { %133 = vmatprep.subr.mxu0 %v59_v40  ;;  %867 = vmatprep.subr.mxu1 %v59_v40  ;;  %v112_v33 = vld [vmem:[%s1477_s1 + $0x108] sm:$0xff]  ;;  %v113_v34 = vld [vmem:[%s1477_s1 + $0x110] sm:$0xff]  ;;  %v114_v35 = vld [vmem:[%s1477_s1 + $0x118] sm:$0xff] }
  0x17   :  { %134 = vmatpush1.msra.mxu0 %v58_v42  ;;  %883 = vmatpush1.msra.mxu1 %v58_v42  ;;  %v95_v36 = vld [vmem:[%s1477_s1 + $0x80] sm:$0xff]  ;;  %v96_v37 = vld [vmem:[%s1477_s1 + $0x88] sm:$0xff]  ;;  %s901_s1 = smov 114  }
  0x18   :  { %135 = vmatprep.subr.mxu0 %v57_v44  ;;  %868 = vmatprep.subr.mxu1 %v57_v44 }
  0x19   :  { %136 = vmatpush1.msra.mxu0 %v56_v46  ;;  %884 = vmatpush1.msra.mxu1 %v56_v46 }
  0x1a   :  { %137 = vmatprep.subr.mxu0 %v55_v48  ;;  %869 = vmatprep.subr.mxu1 %v55_v48 }
  0x1b   :  { %138 = vmatpush1.msra.mxu0 %v54_v50  ;;  %885 = vmatpush1.msra.mxu1 %v54_v50 }
  0x1c   :  { %139 = vmatprep.subr.mxu0 %v53_v52  ;;  %870 = vmatprep.subr.mxu1 %v53_v52 }
  0x1d   :  { %140 = vmatpush1.msra.mxu0 %v52_v54  ;;  %886 = vmatpush1.msra.mxu1 %v52_v54 }
  0x1e   :  { %141 = vmatprep.subr.mxu0 %v51_v56  ;;  %871 = vmatprep.subr.mxu1 %v51_v56 }
  0x1f   :  { %142 = vmatpush1.msra.mxu0 %v50_v58  ;;  %887 = vmatpush1.msra.mxu1 %v50_v58 }
  0x20   :  { %143 = vmatprep.subr.mxu0 %v49_v60  ;;  %872 = vmatprep.subr.mxu1 %v49_v60 }
  0x21   :  { %144 = vmatpush1.msra.mxu0 %v48_v62  ;;  %888 = vmatpush1.msra.mxu1 %v48_v62 }
  0x22   :  { %145 = vmatprep.subr.mxu0 %v47_v63  ;;  %873 = vmatprep.subr.mxu1 %v47_v63 }
  0x23   :  { %146 = vmatpush1.msra.mxu0 %v46_v0  ;;  %889 = vmatpush1.msra.mxu1 %v46_v0 }
  0x24   :  { %180 = vmatmul.mubr.f32.vlgmr.msra.gmra.mxu0 %v79_v1  ;;  %288 = vmatmul.mubr.f32.vlgmr.msra.gmra.mxu1 %v97_v2 }
  0x25   :  { %185 = vmatprep.mubr.f32.mxu0 %v899_v3  ;;  %293 = vmatprep.mubr.f32.mxu1 %v899_v3 }
  0x28   :  { %186 = vmatmul.mubr.f32.gmra.mxu0 %v80_v4  ;;  %294 = vmatmul.mubr.f32.gmra.mxu1 %v98_v5 }
  0x29   :  { %191 = vmatprep.mubr.f32.mxu0 %v899_v3  ;;  %299 = vmatprep.mubr.f32.mxu1 %v899_v3 }
  0x2c   :  { %192 = vmatmul.mubr.f32.gmra.mxu0 %v81_v6  ;;  %300 = vmatmul.mubr.f32.gmra.mxu1 %v99_v7 }
  0x2d   :  { %197 = vmatprep.mubr.f32.mxu0 %v899_v3  ;;  %305 = vmatprep.mubr.f32.mxu1 %v899_v3 }
  0x30   :  { %198 = vmatmul.mubr.f32.gmra.mxu0 %v82_v8  ;;  %306 = vmatmul.mubr.f32.gmra.mxu1 %v100_v9 }
  0x31   :  { %203 = vmatprep.mubr.f32.mxu0 %v899_v3  ;;  %311 = vmatprep.mubr.f32.mxu1 %v899_v3 }
  0x34   :  { %204 = vmatmul.mubr.f32.gmra.mxu0 %v83_v10  ;;  %312 = vmatmul.mubr.f32.gmra.mxu1 %v101_v11 }
  0x35   :  { %209 = vmatprep.mubr.f32.mxu0 %v899_v3  ;;  %317 = vmatprep.mubr.f32.mxu1 %v899_v3 }
  0x38   :  { %210 = vmatmul.mubr.f32.gmra.mxu0 %v84_v12  ;;  %318 = vmatmul.mubr.f32.gmra.mxu1 %v102_v13 }
  0x39   :  { %215 = vmatprep.mubr.f32.mxu0 %v899_v3  ;;  %323 = vmatprep.mubr.f32.mxu1 %v899_v3 }
  0x3c   :  { %216 = vmatmul.mubr.f32.gmra.mxu0 %v85_v14  ;;  %324 = vmatmul.mubr.f32.gmra.mxu1 %v103_v15 }
  0x3d   :  { %221 = vmatprep.mubr.f32.mxu0 %v899_v3  ;;  %329 = vmatprep.mubr.f32.mxu1 %v899_v3 }
  0x40   :  { %222 = vmatmul.mubr.f32.gmra.mxu0 %v86_v16  ;;  %330 = vmatmul.mubr.f32.gmra.mxu1 %v104_v17 }
  0x41   :  { %227 = vmatprep.mubr.f32.mxu0 %v899_v3  ;;  %335 = vmatprep.mubr.f32.mxu1 %v899_v3 }
  0x44   :  { %228 = vmatmul.mubr.f32.gmra.mxu0 %v87_v18  ;;  %336 = vmatmul.mubr.f32.gmra.mxu1 %v105_v19 }
  0x45   :  { %233 = vmatprep.mubr.f32.mxu0 %v899_v3  ;;  %341 = vmatprep.mubr.f32.mxu1 %v899_v3 }
  0x48   :  { %234 = vmatmul.mubr.f32.gmra.mxu0 %v88_v20  ;;  %342 = vmatmul.mubr.f32.gmra.mxu1 %v106_v21 }
  0x49   :  { %239 = vmatprep.mubr.f32.mxu0 %v899_v3  ;;  %347 = vmatprep.mubr.f32.mxu1 %v899_v3 }
  0x4c   :  { %240 = vmatmul.mubr.f32.gmra.mxu0 %v89_v22  ;;  %348 = vmatmul.mubr.f32.gmra.mxu1 %v107_v23 }
  0x4d   :  { %245 = vmatprep.mubr.f32.mxu0 %v899_v3  ;;  %353 = vmatprep.mubr.f32.mxu1 %v899_v3 }
  0x50   :  { %246 = vmatmul.mubr.f32.gmra.mxu0 %v90_v24  ;;  %354 = vmatmul.mubr.f32.gmra.mxu1 %v108_v25 }
  0x51   :  { %251 = vmatprep.mubr.f32.mxu0 %v899_v3  ;;  %359 = vmatprep.mubr.f32.mxu1 %v899_v3 }
  0x54   :  { %252 = vmatmul.mubr.f32.gmra.mxu0 %v91_v26  ;;  %360 = vmatmul.mubr.f32.gmra.mxu1 %v109_v27 }
  0x55   :  { %257 = vmatprep.mubr.f32.mxu0 %v899_v3  ;;  %365 = vmatprep.mubr.f32.mxu1 %v899_v3 }
  0x58   :  { %258 = vmatmul.mubr.f32.gmra.mxu0 %v92_v28  ;;  %366 = vmatmul.mubr.f32.gmra.mxu1 %v110_v29 }
  0x59   :  { %263 = vmatprep.mubr.f32.mxu0 %v899_v3  ;;  %371 = vmatprep.mubr.f32.mxu1 %v899_v3 }
  0x5c   :  { %264 = vmatmul.mubr.f32.gmra.mxu0 %v93_v30  ;;  %372 = vmatmul.mubr.f32.gmra.mxu1 %v111_v31 }
  0x5d   :  { %269 = vmatprep.mubr.f32.mxu0 %v899_v3  ;;  %377 = vmatprep.mubr.f32.mxu1 %v899_v3 }
  0x60   :  { %270 = vmatmul.mubr.f32.gmra.mxu0 %v94_v32  ;;  %378 = vmatmul.mubr.f32.gmra.mxu1 %v112_v33 }
  0x61   :  { %383 = vmatprep.mubr.f32.mxu1 %v899_v3  ;;  %275 = vmatprep.mubr.f32.mxu0 %v899_v3 }
  0x64   :  { %384 = vmatmul.mubr.f32.gmra.mxu1 %v113_v34  ;;  %276 = vmatmul.mubr.f32.gmra.mxu0 %v95_v36 }
  0x65   :  { %389 = vmatprep.mubr.f32.mxu1 %v899_v3  ;;  %281 = vmatprep.mubr.f32.mxu0 %v899_v3 }
  0x68   :  { %390 = vmatmul.mubr.f32.gmra.mxu1 %v114_v35  ;;  %282 = vmatmul.mubr.f32.gmra.mxu0 %v96_v37 }
  0xe4   :  { %v181_v38 = vpop.f32.mrf.mxu0  ;;  %v1168_v39 = vpop.f32.mrf.mxu1 }
  0xe5   :  { %404 = vrot.lane.b32.xlu0 %v181_v38, %s900_s10 }
  0xe6   :  { %v183_v40 = vpop.f32.mrf.mxu0  ;;  %v1170_v41 = vpop.f32.mrf.mxu1 }
  0xe8   :  { %v187_v42 = vpop.f32.mrf.mxu0  ;;  %v1172_v43 = vpop.f32.mrf.mxu1 }
  0xe9   :  { %406 = vrot.lane.b32.xlu0 %v183_v40, %s900_s10  ;;  %408 = vrot.lane.b32.xlu1 %v187_v42, %s900_s10 }
  0xea   :  { %v189_v44 = vpop.f32.mrf.mxu0  ;;  %v1174_v3 = vpop.f32.mrf.mxu1 }
  0xec   :  { %v193_v45 = vpop.f32.mrf.mxu0  ;;  %v301_v46 = vpop.f32.mrf.mxu1 }
  0xed   :  { %410 = vrot.lane.b32.xlu1 %v189_v44, %s900_s10  ;;  %412 = vrot.lane.b32.xlu0 %v193_v45, %s900_s10 }
  0xee   :  { %v195_v47 = vpop.f32.mrf.mxu0  ;;  %v303_v49 = vpop.f32.mrf.mxu1 }
  0xf0   :  { %v199_v48 = vpop.f32.mrf.mxu0  ;;  %v307_v50 = vpop.f32.mrf.mxu1 }
  0xf1   :  { %620 = vrot.lane.b32.xlu0 %v301_v46, %s901_s1  ;;  %414 = vrot.lane.b32.xlu1 %v195_v47, %s900_s10 }
  0xf2   :  { %v201_v51 = vpop.f32.mrf.mxu0  ;;  %v309_v53 = vpop.f32.mrf.mxu1 }
  0xf4   :  { %v205_v52 = vpop.f32.mrf.mxu0  ;;  %v313_v54 = vpop.f32.mrf.mxu1 }
  0xf5   :  { %622 = vrot.lane.b32.xlu1 %v303_v49, %s901_s1  ;;  %416 = vrot.lane.b32.xlu0 %v199_v48, %s900_s10 }
  0xf6   :  { %v207_v55 = vpop.f32.mrf.mxu0  ;;  %v315_v57 = vpop.f32.mrf.mxu1 }
  0xf8   :  { %v211_v56 = vpop.f32.mrf.mxu0  ;;  %v319_v58 = vpop.f32.mrf.mxu1 }
  0xf9   :  { %624 = vrot.lane.b32.xlu0 %v307_v50, %s901_s1  ;;  %418 = vrot.lane.b32.xlu1 %v201_v51, %s900_s10 }
  0xfa   :  { %v213_v59 = vpop.f32.mrf.mxu0  ;;  %v321_v61 = vpop.f32.mrf.mxu1 }
  0xfc   :  { %v217_v60 = vpop.f32.mrf.mxu0  ;;  %v325_v62 = vpop.f32.mrf.mxu1 }
  0xfd   :  { %626 = vrot.lane.b32.xlu1 %v309_v53, %s901_s1  ;;  %445 = vrot.lane.b32.xlu0 %v205_v52, %s902_s11 }
  0xfe   :  { %v219_v63 = vpop.f32.mrf.mxu0  ;;  %v327_v1 = vpop.f32.mrf.mxu1 }
 0x100   :  { %v223_v0 = vpop.f32.mrf.mxu0  ;;  %v331_v2 = vpop.f32.mrf.mxu1 }
 0x101   :  { %628 = vrot.lane.b32.xlu0 %v313_v54, %s901_s1  ;;  %447 = vrot.lane.b32.xlu1 %v207_v55, %s902_s11 }
 0x102   :  { %v225_v4 = vpop.f32.mrf.mxu0  ;;  %v333_v6 = vpop.f32.mrf.mxu1 }
 0x104   :  { %v229_v5 = vpop.f32.mrf.mxu0  ;;  %v337_v7 = vpop.f32.mrf.mxu1 }
 0x105   :  { %630 = vrot.lane.b32.xlu1 %v315_v57, %s901_s1  ;;  %449 = vrot.lane.b32.xlu0 %v211_v56, %s902_s11 }
 0x106   :  { %v231_v8 = vpop.f32.mrf.mxu0  ;;  %v339_v10 = vpop.f32.mrf.mxu1 }
 0x108   :  { %v235_v9 = vpop.f32.mrf.mxu0  ;;  %v343_v11 = vpop.f32.mrf.mxu1 }
 0x109   :  { %632 = vrot.lane.b32.xlu0 %v319_v58, %s901_s1  ;;  %451 = vrot.lane.b32.xlu1 %v213_v59, %s902_s11 }
 0x10a   :  { %v237_v12 = vpop.f32.mrf.mxu0  ;;  %v345_v14 = vpop.f32.mrf.mxu1 }
 0x10c   :  { %v241_v13 = vpop.f32.mrf.mxu0  ;;  %v349_v15 = vpop.f32.mrf.mxu1 }
 0x10d   :  { %634 = vrot.lane.b32.xlu1 %v321_v61, %s901_s1  ;;  %453 = vrot.lane.b32.xlu0 %v217_v60, %s902_s11 }
 0x10e   :  { %v243_v16 = vpop.f32.mrf.mxu0  ;;  %v351_v18 = vpop.f32.mrf.mxu1 }
 0x110   :  { %v247_v17 = vpop.f32.mrf.mxu0  ;;  %v355_v19 = vpop.f32.mrf.mxu1 }
 0x111   :  { %678 = vrot.lane.b32.xlu0 %v325_v62, %s903_s12  ;;  %455 = vrot.lane.b32.xlu1 %v219_v63, %s902_s11 }
 0x112   :  { %v249_v20 = vpop.f32.mrf.mxu0  ;;  %v357_v22 = vpop.f32.mrf.mxu1 }
 0x114   :  { %v253_v21 = vpop.f32.mrf.mxu0  ;;  %v361_v23 = vpop.f32.mrf.mxu1 }
 0x115   :  { %680 = vrot.lane.b32.xlu1 %v327_v1, %s903_s12  ;;  %457 = vrot.lane.b32.xlu0 %v223_v0, %s902_s11 }
 0x116   :  { %v255_v24 = vpop.f32.mrf.mxu0  ;;  %v363_v25 = vpop.f32.mrf.mxu1 }
 0x118   :  { %v259_v26 = vpop.f32.mrf.mxu0  ;;  %v367_v27 = vpop.f32.mrf.mxu1 }
 0x119   :  { %682 = vrot.lane.b32.xlu0 %v331_v2, %s903_s12  ;;  %459 = vrot.lane.b32.xlu1 %v225_v4, %s902_s11 }
 0x11a   :  { %v261_v28 = vpop.f32.mrf.mxu0  ;;  %v369_v29 = vpop.f32.mrf.mxu1 }
 0x11c   :  { %v265_v30 = vpop.f32.mrf.mxu0  ;;  %v373_v31 = vpop.f32.mrf.mxu1 }
 0x11d   :  { %684 = vrot.lane.b32.xlu1 %v333_v6, %s903_s12  ;;  %494 = vrot.lane.b32.xlu0 %v229_v5, %s904_s13 }
 0x11e   :  { %v375_v32 = vpop.f32.mrf.mxu1  ;;  %v267_v33 = vpop.f32.mrf.mxu0 }
 0x120   :  { %v379_v34 = vpop.f32.mrf.mxu1  ;;  %v271_v35 = vpop.f32.mrf.mxu0 }
 0x121   :  { %686 = vrot.lane.b32.xlu0 %v337_v7, %s903_s12  ;;  %496 = vrot.lane.b32.xlu1 %v231_v8, %s904_s13 }
 0x122   :  { %v381_v36 = vpop.f32.mrf.mxu1  ;;  %v273_v38 = vpop.f32.mrf.mxu0 }
 0x124   :  { %v385_v40 = vpop.f32.mrf.mxu1 }
 0x125   :  { %688 = vrot.lane.b32.xlu1 %v339_v10, %s903_s12  ;;  %498 = vrot.lane.b32.xlu0 %v235_v9, %s904_s13 }
 0x126   :  { %v387_v46 = vpop.f32.mrf.mxu1 }
 0x128   :  { %v391_v50 = vpop.f32.mrf.mxu1 }
 0x129   :  { %690 = vrot.lane.b32.xlu0 %v343_v11, %s903_s12  ;;  %500 = vrot.lane.b32.xlu1 %v237_v12, %s904_s13 }
 0x12a   :  { %v393_v53 = vpop.f32.mrf.mxu1 }
 0x12d   :  { %692 = vrot.lane.b32.xlu1 %v345_v14, %s903_s12  ;;  %502 = vrot.lane.b32.xlu0 %v241_v13, %s904_s13 }
 0x131   :  { %719 = vrot.lane.b32.xlu0 %v349_v15, %s905_s14  ;;  %504 = vrot.lane.b32.xlu1 %v243_v16, %s904_s13 }
 0x135   :  { %721 = vrot.lane.b32.xlu1 %v351_v18, %s905_s14  ;;  %506 = vrot.lane.b32.xlu0 %v247_v17, %s904_s13 }
 0x139   :  { %723 = vrot.lane.b32.xlu0 %v355_v19, %s905_s14  ;;  %508 = vrot.lane.b32.xlu1 %v249_v20, %s904_s13 }
 0x13d   :  { %725 = vrot.lane.b32.xlu1 %v357_v22, %s905_s14  ;;  %571 = vrot.lane.b32.xlu0 %v253_v21, %s906_s15 }
 0x141   :  { %727 = vrot.lane.b32.xlu0 %v361_v23, %s905_s14  ;;  %573 = vrot.lane.b32.xlu1 %v255_v24, %s906_s15 }
 0x145   :  { %729 = vrot.lane.b32.xlu1 %v363_v25, %s905_s14  ;;  %575 = vrot.lane.b32.xlu0 %v259_v26, %s906_s15 }
 0x149   :  { %731 = vrot.lane.b32.xlu0 %v367_v27, %s905_s14  ;;  %577 = vrot.lane.b32.xlu1 %v261_v28, %s906_s15 }
 0x14d   :  { %733 = vrot.lane.b32.xlu1 %v369_v29, %s905_s14  ;;  %579 = vrot.lane.b32.xlu0 %v265_v30, %s906_s15 }
 0x151   :  { %769 = vrot.lane.b32.xlu0 %v373_v31, %s907_s16  ;;  %581 = vrot.lane.b32.xlu1 %v267_v33, %s906_s15 }
 0x155   :  { %771 = vrot.lane.b32.xlu1 %v375_v32, %s907_s16  ;;  %583 = vrot.lane.b32.xlu0 %v271_v35, %s906_s15 }
 0x157   :  { %v405_v37 = vpop.permute.xlu0 %404 }
 0x158   :  { %v433_v63 = vsel %vm420_vm0, 0.0, %v405_v37 }
 0x159   :  { %585 = vrot.lane.b32.xlu1 %v273_v38, %s906_s15  ;;  %773 = vrot.lane.b32.xlu0 %v379_v34, %s907_s16 }
 0x15b   :  { %v407_v42 = vpop.permute.xlu0 %406  ;;  %v409_v44 = vpop.permute.xlu1 %408 }
 0x15c   :  { %v421_v45 = vsel %vm420_vm0, %v405_v37, %v407_v42  ;;  %v434_v10 = vsel %vm420_vm0, 0.0, %v409_v44 }
 0x15d   :  { %775 = vrot.lane.b32.xlu1 %v381_v36, %s907_s16  ;;  %777 = vrot.lane.b32.xlu0 %v385_v40, %s907_s16 }
 0x15f   :  { %v411_v47 = vpop.permute.xlu1 %410  ;;  %v413_v48 = vpop.permute.xlu0 %412 }
 0x160   :  { %v422_v49 = vsel %vm420_vm0, %v409_v44, %v411_v47  ;;  %v435_v20 = vsel %vm420_vm0, 0.0, %v413_v48 }
 0x161   :  { %779 = vrot.lane.b32.xlu1 %v387_v46, %s907_s16  ;;  %781 = vrot.lane.b32.xlu0 %v391_v50, %s907_s16 }
 0x163   :  { %v621_v51 = vpop.permute.xlu0 %620  ;;  %v415_v52 = vpop.permute.xlu1 %414 }
 0x164   :  { %v423_v54 = vsel %vm420_vm0, %v413_v48, %v415_v52  ;;  %v537_v48 = vlaneseq }
 0x165   :  { %783 = vrot.lane.b32.xlu1 %v393_v53, %s907_s16 }
 0x167   :  { %v1211_v55 = vpop.permute.xlu1 %622  ;;  %v417_v56 = vpop.permute.xlu0 %416 }
 0x168   :  { %v1215_v57 = vsel %vm636_vm1, %v621_v51, %v1211_v55  ;;  %v436_v30 = vsel %vm420_vm0, 0.0, %v417_v56  ;;  %v1280_v51 = vshrl.u32 %v537_v48, 7 }
 0x16b   :  { %v625_v58 = vpop.permute.xlu0 %624  ;;  %v419_v59 = vpop.permute.xlu1 %418 }
 0x16c   :  { %v424_v60 = vsel %vm420_vm0, %v417_v56, %v419_v59  ;;  %v1292_v59 = vld [vmem:[%s1478_s2] sm:$0xf] }
 0x16f   :  { %v1218_v61 = vpop.permute.xlu1 %626  ;;  %v446_v62 = vpop.permute.xlu0 %445 }
 0x170   :  { %v1223_v0 = vsel %vm636_vm1, %v625_v58, %v1218_v61  ;;  %v474_v1 = vsel %vm461_vm2, 0.0, %v446_v62 }
 0x171   :  { %v1226_v2 = vadd.f32 %v474_v1, %v433_v63 }
 0x173   :  { %v629_v4 = vpop.permute.xlu0 %628  ;;  %v448_v5 = vpop.permute.xlu1 %447 }
 0x174   :  { %v462_v6 = vsel %vm461_vm2, %v446_v62, %v448_v5  ;;  %v543_v62 = vsub.s32 2, %v1280_v51  ;;  %v277_v5 = vpop.f32.mrf.mxu0 }
 0x175   :  { %v1229_v7 = vadd.f32 %v462_v6, %v421_v45 }
 0x176   :  { %v544_v6 = vrot.slane %v1292_v59, %v543_v62 }
 0x177   :  { %v1231_v8 = vpop.permute.xlu1 %630  ;;  %v450_v9 = vpop.permute.xlu0 %449 }
 0x178   :  { %v1236_v11 = vsel %vm636_vm1, %v629_v4, %v1231_v8  ;;  %v475_v12 = vsel %vm461_vm2, 0.0, %v450_v9 }
 0x179   :  { %v1239_v13 = vadd.f32 %v475_v12, %v434_v10 }
 0x17b   :  { %v633_v14 = vpop.permute.xlu0 %632  ;;  %v452_v15 = vpop.permute.xlu1 %451 }
 0x17c   :  { %v463_v16 = vsel %vm461_vm2, %v450_v9, %v452_v15 }
 0x17d   :  { %v1242_v17 = vadd.f32 %v463_v16, %v422_v49 }
 0x17f   :  { %v1244_v18 = vpop.permute.xlu1 %634  ;;  %v454_v19 = vpop.permute.xlu0 %453 }
 0x180   :  { %v1249_v21 = vsel %vm636_vm1, %v633_v14, %v1244_v18  ;;  %v476_v22 = vsel %vm461_vm2, 0.0, %v454_v19 }
 0x181   :  { %v1252_v23 = vadd.f32 %v476_v22, %v435_v20  ;;  %v279_v20 = vpop.f32.mrf.mxu0 }
 0x183   :  { %v1254_v24 = vpop.permute.xlu0 %678  ;;  %v456_v25 = vpop.permute.xlu1 %455 }
 0x184   :  { %v464_v26 = vsel %vm461_vm2, %v454_v19, %v456_v25  ;;  %v283_v48 = vpop.f32.mrf.mxu0 }
 0x185   :  { %v1257_v27 = vadd.f32 %v464_v26, %v423_v54  ;;  %v539_v54 = vsub.s32 0, %v1280_v51 }
 0x187   :  { %v1259_v28 = vpop.permute.xlu1 %680  ;;  %v458_v29 = vpop.permute.xlu0 %457  ;;  %v1309_v22 = vrot.slane %v544_v6, %v539_v54 }
 0x188   :  { %v477_v31 = vsel %vm461_vm2, 0.0, %v458_v29 }
 0x189   :  { %v1263_v32 = vadd.f32 %v477_v31, %v436_v30 }
 0x18b   :  { %v1265_v33 = vpop.permute.xlu0 %682  ;;  %v460_v34 = vpop.permute.xlu1 %459 }
 0x18c   :  { %v465_v35 = vsel %vm461_vm2, %v458_v29, %v460_v34 }
 0x18d   :  { %v1268_v36 = vadd.f32 %v465_v35, %v424_v60  ;;  %v540_v60 = vrot.slane %v1292_v59, %v539_v54 }
 0x18f   :  { %v1270_v37 = vpop.permute.xlu1 %684  ;;  %v495_v38 = vpop.permute.xlu0 %494  ;;  %v1302_v9 = vrot.slane %v540_v60, %v539_v54 }
 0x193   :  { %v1272_v40 = vpop.permute.xlu0 %686  ;;  %v497_v42 = vpop.permute.xlu1 %496 }
 0x194   :  { %v511_v4 = vsel %vm510_vm3, %v495_v38, %v497_v42  ;;  %v524_v15 = vsel %vm523_vm4, %v497_v42, 0.0  ;;  %v650_v42 = vsel %vm649_vm6, %v1211_v55, 0.0 }
 0x195   :  { %v528_v10 = vadd.f32 %v511_v4, %v1226_v2  ;;  %v529_v25 = vadd.f32 %v524_v15, %v1229_v7 }
 0x197   :  { %v1274_v44 = vpop.permute.xlu1 %688  ;;  %v499_v45 = vpop.permute.xlu0 %498  ;;  %v555_v26 = vmul.f32 %v1302_v9, %v528_v10  ;;  %v556_v7 = vmul.f32 %v1309_v22, %v529_v25 }
 0x198   :  { %v285_v10 = vpop.f32.mrf.mxu0 }
 0x19b   :  { %v1276_v46 = vpop.permute.xlu0 %690  ;;  %v501_v47 = vpop.permute.xlu1 %500 }
 0x19c   :  { %v512_v31 = vsel %vm510_vm3, %v499_v45, %v501_v47  ;;  %v525_v4 = vsel %vm523_vm4, %v501_v47, 0.0  ;;  %v813_v47 = vsub.s32 1, %v1280_v51 }
 0x19d   :  { %v530_v54 = vadd.f32 %v512_v31, %v1239_v13 }
 0x19f   :  { %v1278_v49 = vpop.permute.xlu1 %692  ;;  %v503_v50 = vpop.permute.xlu0 %502  ;;  %v557_v55 = vmul.f32 %v1302_v9, %v530_v54 }
 0x1a3   :  { %v1282_v52 = vpop.permute.xlu0 %719  ;;  %v505_v53 = vpop.permute.xlu1 %504 }
 0x1a7   :  { %v1285_v56 = vpop.permute.xlu1 %721  ;;  %v1287_v58 = vpop.permute.xlu0 %506 }
 0x1a8   :  { %v736_v54 = vsel %vm735_vm7, %v1282_v52, %v1285_v56 }
 0x1ab   :  { %v1296_v63 = vpop.permute.xlu0 %723  ;;  %v1298_v1 = vpop.permute.xlu1 %508 }
 0x1af   :  { %v1305_v12 = vpop.permute.xlu1 %725  ;;  %v572_v14 = vpop.permute.xlu0 %571 }
 0x1b0   :  { %v600_v16 = vsel %vm587_vm5, 0.0, %v572_v14 }
 0x1b1   :  { %v604_v19 = vadd.f32 %v600_v16, %v277_v5 }
 0x1b3   :  { %v654_v29 = vadd.f32 %v1215_v57, %v604_v19  ;;  %v1314_v30 = vpop.permute.xlu0 %727  ;;  %v574_v2 = vpop.permute.xlu1 %573  ;;  %v513_v19 = vsel %vm510_vm3, %v503_v50, %v505_v53 }
 0x1b4   :  { %v588_v34 = vsel %vm587_vm5, %v572_v14, %v574_v2  ;;  %v531_v14 = vadd.f32 %v525_v4, %v1242_v17  ;;  %v651_v17 = vsel %vm649_vm6, %v1218_v61, 0.0  ;;  %v532_v31 = vadd.f32 %v513_v19, %v1252_v23 }
 0x1b5   :  { %v1318_v35 = vadd.f32 %v654_v29, %v555_v26  ;;  %v605_v38 = vadd.f32 %v588_v34, %v279_v20  ;;  %v817_v29 = vsub.s32 3, %v1280_v51 }
 0x1b6   :  { %v558_v2 = vmul.f32 %v1309_v22, %v531_v14  ;;  %v559_v23 = vmul.f32 %v1302_v9, %v532_v31 }
 0x1b7   :  { %v655_v60 = vadd.f32 %v650_v42, %v605_v38  ;;  %v1324_v57 = vpop.permute.xlu1 %729  ;;  %v576_v62 = vpop.permute.xlu0 %575 }
 0x1b8   :  { %v601_v45 = vsel %vm587_vm5, 0.0, %v576_v62 }
 0x1b9   :  { %v1328_v5 = vadd.f32 %v655_v60, %v556_v7  ;;  %v606_v6 = vadd.f32 %v601_v45, %v283_v48  ;;  %v814_v48 = vrot.slane %v1292_v59, %v813_v47  ;;  %v818_v7 = vrot.slane %v1292_v59, %v817_v29 }
 0x1ba   :  { %v514_v59 = vsel %vm510_vm3, %v1287_v58, %v1298_v1  ;;  %v695_v58 = vsel %vm694_vm9, %v1254_v24, %v1259_v28 }
 0x1bb   :  { %v656_v15 = vadd.f32 %v1223_v0, %v606_v6  ;;  %v1333_v16 = vpop.permute.xlu0 %731  ;;  %v578_v13 = vpop.permute.xlu1 %577  ;;  %v526_v0 = vsel %vm523_vm4, %v505_v53, 0.0  ;;  %v1366_v45 = vrot.slane %v814_v48, %v813_v47  ;;  %v707_v6 = vsel %vm694_vm9, 0.0, %v1254_v24 }
 0x1bc   :  { %v589_v20 = vsel %vm587_vm5, %v576_v62, %v578_v13  ;;  %v533_v53 = vadd.f32 %v526_v0, %v1257_v27  ;;  %v527_v13 = vsel %vm523_vm4, %v1298_v1, 0.0  ;;  %v534_v19 = vadd.f32 %v514_v59, %v1263_v32 }
 0x1bd   :  { %v1338_v25 = vadd.f32 %v656_v15, %v557_v55  ;;  %v607_v26 = vadd.f32 %v589_v20, %v285_v10  ;;  %v1373_v10 = vrot.slane %v818_v7, %v813_v47  ;;  %v753_v55 = vadd.f32 %v736_v54, %v707_v6 }
 0x1be   :  { %v560_v14 = vmul.f32 %v1309_v22, %v533_v53  ;;  %v535_v0 = vadd.f32 %v527_v13, %v1268_v36  ;;  %v561_v1 = vmul.f32 %v1302_v9, %v534_v19  ;;  %v737_v48 = vsel %vm735_vm7, %v1296_v63, %v1305_v12 }
 0x1bf   :  { %v657_v34 = vadd.f32 %v651_v17, %v607_v26  ;;  %v1346_v50 = vpop.permute.xlu1 %733  ;;  %v580_v38 = vpop.permute.xlu0 %579  ;;  %v696_v63 = vsel %vm694_vm9, %v1265_v33, %v1270_v37  ;;  %v709_v59 = vsel %vm694_vm9, 0.0, %v1272_v40 }
 0x1c0   :  { %v602_v42 = vsel %vm587_vm5, 0.0, %v580_v38 }
 0x1c1   :  { %v1350_v51 = vadd.f32 %v657_v34, %v558_v2  ;;  %v608_v61 = vadd.f32 %v602_v42, %v1168_v39  ;;  %v749_v39 = vsel %vm748_vm8, %v1285_v56, 0.0  ;;  %v652_v56 = vsel %vm649_vm6, %v1231_v8, 0.0 }
 0x1c2   :  { %v754_v15 = vadd.f32 %v749_v39, %v695_v58  ;;  %v739_v58 = vsel %vm735_vm7, %v1333_v16, %v1346_v50  ;;  %v698_v16 = vsel %vm694_vm9, %v1276_v46, %v1278_v49 }
 0x1c3   :  { %v658_v60 = vadd.f32 %v1236_v11, %v608_v61  ;;  %v770_v62 = vpop.permute.xlu0 %769  ;;  %v582_v4 = vpop.permute.xlu1 %581  ;;  %v750_v61 = vsel %vm748_vm8, %v1305_v12, 0.0  ;;  %v562_v12 = vmul.f32 %v1309_v22, %v535_v0 }
 0x1c4   :  { %v590_v27 = vsel %vm587_vm5, %v580_v38, %v582_v4 }
 0x1c5   :  { %v1370_v52 = vadd.f32 %v658_v60, %v559_v23  ;;  %v609_v11 = vadd.f32 %v590_v27, %v1170_v41  ;;  %v708_v23 = vsel %vm694_vm9, 0.0, %v1265_v33  ;;  %v756_v60 = vadd.f32 %v750_v61, %v696_v63 }
 0x1c6   :  { %v755_v54 = vadd.f32 %v737_v48, %v708_v23  ;;  %v751_v33 = vsel %vm748_vm8, %v1324_v57, 0.0  ;;  %v697_v27 = vsel %vm694_vm9, %v1272_v40, %v1274_v44 }
 0x1c7   :  { %v659_v20 = vadd.f32 %v652_v56, %v609_v11  ;;  %v772_v41 = vpop.permute.xlu1 %771  ;;  %v584_v47 = vpop.permute.xlu0 %583 }
 0x1c8   :  { %v786_v26 = vsel %vm785_vm10, %v770_v62, %v772_v41  ;;  %v799_v8 = vsel %vm798_vm11, %v772_v41, 0.0  ;;  %v603_v29 = vsel %vm587_vm5, 0.0, %v584_v47 }
 0x1c9   :  { %v1387_v17 = vadd.f32 %v659_v20, %v560_v14  ;;  %v803_v24 = vadd.f32 %v786_v26, %v753_v55  ;;  %v804_v28 = vadd.f32 %v799_v8, %v754_v15  ;;  %v610_v2 = vadd.f32 %v603_v29, %v1172_v43 }
 0x1ca   :  { %v752_v14 = vsel %vm748_vm8, %v1346_v50, 0.0  ;;  %v710_v20 = vsel %vm694_vm9, 0.0, %v1276_v46 }
 0x1cb   :  { %v829_v32 = vmul.f32 %v1366_v45, %v803_v24  ;;  %v830_v31 = vmul.f32 %v1373_v10, %v804_v28  ;;  %v660_v34 = vadd.f32 %v1249_v21, %v610_v2  ;;  %v586_v38 = vpop.permute.xlu1 %585  ;;  %v774_v42 = vpop.permute.xlu0 %773  ;;  %v653_v21 = vsel %vm649_vm6, %v1244_v18, 0.0 }
 0x1cc   :  { %v591_v43 = vsel %vm587_vm5, %v584_v47, %v586_v38  ;;  %v759_v41 = vadd.f32 %v739_v58, %v710_v20  ;;  %v760_v47 = vadd.f32 %v752_v14, %v698_v16 }
 0x1cd   :  { %v837_v36 = vadd.f32 %v829_v32, %v1318_v35  ;;  %v838_v9 = vadd.f32 %v830_v31, %v1328_v5  ;;  %v668_v7 = vadd.f32 %v660_v34, %v561_v1  ;;  %v611_v53 = vadd.f32 %v591_v43, %v1174_v3 }
 0x1ce   :  { %v738_v35 = vsel %vm735_vm7, %v1314_v30, %v1324_v57  ;;  %v758_v30 = vadd.f32 %v751_v33, %v697_v27 }
 0x1cf   :  { %845 = vst [vmem:[%s1479_s3] sm:$0xff] %v837_v36  ;;  %847 = vst.msk [vmem:[%s1479_s3 + $0x8] sm:$0xff] %vm846_vm12, %v838_v9  ;;  %v661_v3 = vadd.f32 %v653_v21, %v611_v53  ;;  %v776_v18 = vpop.permute.xlu1 %775  ;;  %v778_v39 = vpop.permute.xlu0 %777  ;;  %v757_v6 = vadd.f32 %v738_v35, %v709_v59 }
 0x1d0   :  { %v787_v37 = vsel %vm785_vm10, %v774_v42, %v776_v18  ;;  %v800_v22 = vsel %vm798_vm11, %v776_v18, 0.0 }
 0x1d1   :  { %v669_v5 = vadd.f32 %v661_v3, %v562_v12  ;;  %v805_v62 = vadd.f32 %v787_v37, %v755_v54  ;;  %v806_v4 = vadd.f32 %v800_v22, %v756_v60 }
 0x1d3   :  { %v831_v11 = vmul.f32 %v1366_v45, %v805_v62  ;;  %v832_v57 = vmul.f32 %v1373_v10, %v806_v4  ;;  %v780_v56 = vpop.permute.xlu1 %779 }
 0x1d4   :  { %v788_v55 = vsel %vm785_vm10, %v778_v39, %v780_v56  ;;  %v801_v15 = vsel %vm798_vm11, %v780_v56, 0.0 }
 0x1d5   :  { %v839_v40 = vadd.f32 %v831_v11, %v1338_v25  ;;  %v840_v44 = vadd.f32 %v832_v57, %v1350_v51  ;;  %v807_v13 = vadd.f32 %v788_v55, %v757_v6  ;;  %v808_v19 = vadd.f32 %v801_v15, %v758_v30  ;;  %v782_v51 = vpop.permute.xlu0 %781 }
 0x1d7   :  { %848 = vst [vmem:[%s1479_s3 + $0x10] sm:$0xff] %v839_v40  ;;  %849 = vst.msk [vmem:[%s1479_s3 + $0x18] sm:$0xff] %vm846_vm12, %v840_v44  ;;  %v833_v25 = vmul.f32 %v1366_v45, %v807_v13  ;;  %v834_v50 = vmul.f32 %v1373_v10, %v808_v19  ;;  %v784_v26 = vpop.permute.xlu1 %783 }
 0x1d8   :  { %v789_v8 = vsel %vm785_vm10, %v782_v51, %v784_v26  ;;  %v802_v46 = vsel %vm798_vm11, %v784_v26, 0.0 }
 0x1d9   :  { %v841_v49 = vadd.f32 %v833_v25, %v1370_v52  ;;  %v842_v29 = vadd.f32 %v834_v50, %v1387_v17  ;;  %v809_v24 = vadd.f32 %v789_v8, %v759_v41  ;;  %v810_v28 = vadd.f32 %v802_v46, %v760_v47 }
 0x1db   :  { %850 = vst [vmem:[%s1479_s3 + $0x20] sm:$0xff] %v841_v49  ;;  %851 = vst.msk [vmem:[%s1479_s3 + $0x28] sm:$0xff] %vm846_vm12, %v842_v29  ;;  %v835_v2 = vmul.f32 %v1366_v45, %v809_v24  ;;  %v836_v0 = vmul.f32 %v1373_v10, %v810_v28 }
 0x1dd   :  { %v843_v1 = vadd.f32 %v835_v2, %v668_v7  ;;  %v844_v32 = vadd.f32 %v836_v0, %v669_v5 }
 0x1df   :  { %852 = vst [vmem:[%s1479_s3 + $0x30] sm:$0xff] %v843_v1  ;;  %853 = vst.msk [vmem:[%s1479_s3 + $0x38] sm:$0xff] %vm846_vm12, %v844_v32 }

</bundles_post_ra>
